<compile_context>
chip_gen: v7x
topology: tpu7x:2x2x1
jax: 0.10.0
libtpu: 0.0.40
codegen_flags: <defaults>
</compile_context>

<pallas_src>
import functools
from math import floor

import jax
import jax.numpy as jnp
from jax import lax
from jax.experimental import pallas as pl
from jax.experimental.pallas import tpu as pltpu

LANE = 128
SUBLANE = 8


def _round_up(x, m):
    return ((x + m - 1) // m) * m


def _pad2d(a, rows, cols):
    return jnp.pad(a, ((0, rows - a.shape[0]), (0, cols - a.shape[1])))


# ----------------------------------------------------------------------------
# Pallas kernel: fused embedding lookup + full MLP chain for one batch tile
# ----------------------------------------------------------------------------
def _mlp_emb_kernel(n_cats, n_num, n_hidden, xi_ref, xn_ref, *refs):
    """refs = (emb_w1_fused, w1_num, b1, [w2, b2, ...], w_fc, b_fc, out_ref).

    Weight/bias refs use constant block indices so they stay resident in VMEM
    across all grid steps. Zero padding + tanh(0)=0 keeps padding exact.
    """
    out_ref = refs[-1]
    wrefs = refs[:-1]
    tb = xi_ref.shape[0]
    scp = wrefs[0].shape[0]                 # lane-padded sum of cardinalities

    # --- fused embedding lookup + embedded half of layer 1 -------------------
    # multi_hot(global_idx) @ (block_diag(tables) @ W1_emb) == gather+concat+
    # Linear.  Offsets are pre-added in the wrapper; per-column hits live in
    # disjoint lane ranges, so logical-OR == sum, one cast at the end.
    xi = xi_ref[...]                                        # (tb, n_cats) int32
    iota = lax.broadcasted_iota(jnp.int32, (tb, scp), 1)
    hit = iota == xi[:, 0:1]
    for i in range(1, n_cats):                              # static unroll
        hit = jnp.logical_or(hit, iota == xi[:, i:i + 1])
    mh = hit.astype(jnp.float32)
    acc = (jnp.dot(mh, wrefs[0][...], preferred_element_type=jnp.float32)
           + wrefs[2][...])                                 # + b1

    # --- numeric half of layer 1: rank-1 VPU updates --------------------------
    # n_numerics is tiny, so this avoids both lane-padding the numeric stream
    # (32x DMA waste) and a small-K MXU matmul.
    xn = xn_ref[...]                                        # (tb, n_num) f32
    w1n = wrefs[1][...]                                     # (n_num, h1_pad)
    for j in range(n_num):                                  # static unroll
        acc = acc + xn[:, j:j + 1] * w1n[j:j + 1, :]
    h = jnp.tanh(acc)                                       # hidden_activation

    # --- remaining hidden layers (static unroll: chain visible to LLO) -------
    for l in range(1, n_hidden):
        w = wrefs[3 + 2 * (l - 1)][...]
        b = wrefs[4 + 2 * (l - 1)][...]
        h = jnp.tanh(jnp.dot(h, w, preferred_element_type=jnp.float32) + b)

    # --- final fc + sigmoid: narrow (tb, 1) store -----------------------------
    w_fc = wrefs[3 + 2 * (n_hidden - 1)][...]
    b_fc = wrefs[4 + 2 * (n_hidden - 1)][...]
    logits = jnp.dot(h, w_fc, preferred_element_type=jnp.float32) + b_fc
    out_ref[...] = jax.nn.sigmoid(logits[:, :1])            # output_activation


# ----------------------------------------------------------------------------
# One-time parameter packing: fold embeddings into W1, pad lane-dense
# ----------------------------------------------------------------------------
def pack_params(emb_tables, neurons_per_embedding, cat_cardinality, n_numerics,
                hidden_ws, hidden_bs, w_fc, b_fc):
    n_cats = len(cat_cardinality)
    sum_card = sum(cat_cardinality)
    d_emb = sum(neurons_per_embedding)
    scp = _round_up(sum_card, LANE)

    hdims = [w.shape[1] for w in hidden_ws]
    hdims_p = [_round_up(h, LANE) for h in hdims]

    # Fold each embedding table directly into the first-layer weight:
    # row (offset_i + j) of emb_fused = table_i[j] @ W1[emb_block_i, :].
    w1 = hidden_ws[0]
    emb_fused = jnp.zeros((scp, hdims_p[0]), jnp.float32)
    offsets = []
    r = c = 0
    for t in emb_tables:
        offsets.append(r)
        blk = t @ w1[c:c + t.shape[1], :]                   # (card_i, h1)
        emb_fused = emb_fused.at[r:r + t.shape[0], :blk.shape[1]].set(blk)
        r += t.shape[0]
        c += t.shape[1]

    # Numeric half of W1: K axis stays raw (NOT lane-padded).
    w1n = _pad2d(w1[d_emb:, :], n_numerics, hdims_p[0])
    b1 = _pad2d(hidden_bs[0], 1, hdims_p[0])
    flat = [emb_fused, w1n, b1]
    for l in range(1, len(hidden_ws)):
        flat.append(_pad2d(hidden_ws[l], hdims_p[l - 1], hdims_p[l]))
        flat.append(_pad2d(hidden_bs[l], 1, hdims_p[l]))
    flat.append(_pad2d(w_fc, hdims_p[-1], LANE))
    flat.append(_pad2d(b_fc, 1, LANE))

    meta = dict(n_cats=n_cats, n_numerics=n_numerics, offsets=tuple(offsets),
                n_hidden=len(hidden_ws))
    return flat, meta


# ----------------------------------------------------------------------------
# Wrapper: batch-tiled pallas_call
# ----------------------------------------------------------------------------
def run_mlp_pallas(x, flat_params, meta, tb=1024):
    n_cats = meta['n_cats']
    n_num = meta['n_numerics']
    n_hidden = meta['n_hidden']
    offsets = jnp.asarray(meta['offsets'], jnp.int32)
    B = x.shape[0]

    # Batch tile: big enough to amortize the ~0.35us/grid-step overhead, never
    # bigger than needed, and split into >= 2 tiles whenever the batch allows
    # so "parallel" can feed both TensorCores on v7x.
    tb = max(SUBLANE, min(tb, _round_up(B, SUBLANE)))
    if B > SUBLANE and _round_up(B, tb) // tb < 2:
        tb = _round_up(-(-B // 2), SUBLANE)
    b_pad = _round_up(B, tb)
    n_tiles = b_pad // tb

    # Fold table offsets into the indices once, outside the kernel.
    x_idx = x[:, :n_cats].astype(jnp.int32) + offsets[None, :]
    x_idx = jnp.pad(x_idx, ((0, b_pad - B), (0, 0)))
    # Numeric stream stays narrow: no lane padding -> no wasted HBM traffic.
    x_num = jnp.pad(x[:, n_cats:n_cats + n_num].astype(jnp.float32),
                    ((0, b_pad - B), (0, 0)))

    kernel = functools.partial(_mlp_emb_kernel, n_cats, n_num, n_hidden)

    xi_spec = pl.BlockSpec((tb, n_cats), lambda i: (i, 0))
    xn_spec = pl.BlockSpec((tb, n_num), lambda i: (i, 0))
    out_spec = pl.BlockSpec((tb, 1), lambda i: (i, 0))      # narrow write
    # Weights/biases: constant block index -> fetched once, resident in VMEM.
    const_specs = [pl.BlockSpec(p.shape, lambda i: (0, 0)) for p in flat_params]

    out = pl.pallas_call(
        kernel,
        out_shape=jax.ShapeDtypeStruct((b_pad, 1), jnp.float32),
        grid=(n_tiles,),
        in_specs=[xi_spec, xn_spec] + const_specs,
        out_specs=out_spec,
        compiler_params=pltpu.CompilerParams(
            dimension_semantics=("parallel",)),              # 2nd TC on v7x
    )(x_idx, x_num, *flat_params)

    return out[:B, :]


# ----------------------------------------------------------------------------
# Module configuration + deterministic parameter init (mirrors __init__)
# ----------------------------------------------------------------------------
def build_params(key, neurons_per_layer, cat_cardinality, n_numerics,
                 card_reduction):
    n_keys = len(cat_cardinality) + 2 * len(neurons_per_layer) + 2
    keys = jax.random.split(key, n_keys)
    kidx = 0

    # get_embeddings()
    neurons_per_embedding = []
    emb_tables = []
    for card in cat_cardinality:
        params_threshold = card * neurons_per_layer[0] / (card + neurons_per_layer[0])
        embedding_dim = floor(params_threshold / card_reduction)
        if embedding_dim == 0:
            embedding_dim = 1
        neurons_per_embedding.append(embedding_dim)
        emb_tables.append(jax.random.normal(keys[kidx], (card, embedding_dim),
                                            dtype=jnp.float32))
        kidx += 1

    # create_mlp(): weights stored pre-transposed as (in, out)
    in_dim = sum(neurons_per_embedding) + n_numerics
    dims = [in_dim] + list(neurons_per_layer)
    hidden_ws, hidden_bs = [], []
    for i in range(len(neurons_per_layer)):
        fan_in = dims[i]
        bound = 1.0 / jnp.sqrt(jnp.float32(fan_in))
        w = jax.random.uniform(keys[kidx], (dims[i], dims[i + 1]),
                               minval=-bound, maxval=bound, dtype=jnp.float32)
        kidx += 1
        b = jax.random.uniform(keys[kidx], (1, dims[i + 1]),
                               minval=-bound, maxval=bound, dtype=jnp.float32)
        kidx += 1
        hidden_ws.append(w)
        hidden_bs.append(b)

    # fc = Linear(neurons_per_layer[-1], 1)
    fan_in = neurons_per_layer[-1]
    bound = 1.0 / jnp.sqrt(jnp.float32(fan_in))
    w_fc = jax.random.uniform(keys[kidx], (fan_in, 1),
                              minval=-bound, maxval=bound, dtype=jnp.float32)
    kidx += 1
    b_fc = jax.random.uniform(keys[kidx], (1, 1),
                              minval=-bound, maxval=bound, dtype=jnp.float32)
    return emb_tables, neurons_per_embedding, hidden_ws, hidden_bs, w_fc, b_fc


def forward_ref(x, emb_tables, n_cats, hidden_ws, hidden_bs, w_fc, b_fc):
    # Pure-JAX reference (gather + concat + Linear/tanh chain + fc/sigmoid).
    embedded = [jnp.take(emb_tables[i], x[:, i].astype(jnp.int32), axis=0)
                for i in range(n_cats)]
    h = jnp.concatenate(embedded + [x[:, n_cats:]], axis=1).astype(jnp.float32)
    for w, b in zip(hidden_ws, hidden_bs):
        h = jnp.tanh(h @ w + b)
    return jax.nn.sigmoid(h @ w_fc + b_fc)


def make_input(key, batch, cat_cardinality, n_numerics):
    n_cats = len(cat_cardinality)
    k_idx, k_num = jax.random.split(key)
    idx_cols = [
        jax.random.randint(jax.random.fold_in(k_idx, i), (batch, 1),
                           0, cat_cardinality[i]).astype(jnp.float32)
        for i in range(n_cats)
    ]
    num_cols = jax.random.normal(k_num, (batch, n_numerics), dtype=jnp.float32)
    return jnp.concatenate(idx_cols + [num_cols], axis=1)


if __name__ == "__main__":
    # Small config consistent with the module:
    neurons_per_layer = [32, 16]
    cat_cardinality = [10, 7]
    n_numerics = 4
    card_reduction = 2

    key = jax.random.PRNGKey(0)
    k_params, k_in0, k_in1 = jax.random.split(key, 3)

    (emb_tables, neurons_per_embedding,
     hidden_ws, hidden_bs, w_fc, b_fc) = build_params(
        k_params, neurons_per_layer, cat_cardinality, n_numerics,
        card_reduction)

    flat_params, meta = pack_params(
        emb_tables, neurons_per_embedding, cat_cardinality, n_numerics,
        hidden_ws, hidden_bs, w_fc, b_fc)

    n_cats = len(cat_cardinality)

    # Test 1: tiny batch (single grid tile).
    x = make_input(k_in0, 8, cat_cardinality, n_numerics)   # (8, 6)
    out = jax.block_until_ready(run_mlp_pallas(x, flat_params, meta))
    ref = forward_ref(x, emb_tables, n_cats, hidden_ws, hidden_bs, w_fc, b_fc)
    assert out.shape == (8, 1)
    assert jnp.allclose(out, ref, atol=1e-4, rtol=1e-4), "mismatch (batch=8)"

    # Test 2: larger batch exercising >=2 grid tiles + padded tail rows.
    x2 = make_input(k_in1, 300, cat_cardinality, n_numerics)
    out2 = jax.block_until_ready(run_mlp_pallas(x2, flat_params, meta))
    ref2 = forward_ref(x2, emb_tables, n_cats, hidden_ws, hidden_bs, w_fc, b_fc)
    assert out2.shape == (300, 1)
    assert jnp.allclose(out2, ref2, atol=1e-4, rtol=1e-4), "mismatch (batch=300)"

    print("KERNEL_OK")
</pallas_src>

<mosaic_0001>
module attributes {stable_mosaic.version = 11 : i64} {
  func.func @_mlp_emb_kernel(%arg0: i32, %arg1: memref<8x2xi32, #tpu.memory_space<vmem>>, %arg2: memref<8x4xf32, #tpu.memory_space<vmem>>, %arg3: memref<128x128xf32, #tpu.memory_space<vmem>>, %arg4: memref<4x128xf32, #tpu.memory_space<vmem>>, %arg5: memref<1x128xf32, #tpu.memory_space<vmem>>, %arg6: memref<128x128xf32, #tpu.memory_space<vmem>>, %arg7: memref<1x128xf32, #tpu.memory_space<vmem>>, %arg8: memref<128x128xf32, #tpu.memory_space<vmem>>, %arg9: memref<1x128xf32, #tpu.memory_space<vmem>>, %arg10: memref<8x1xf32, #tpu.memory_space<vmem>>) attributes {dimension_semantics = [#tpu.dimension_semantics<parallel>], iteration_bounds = array<i64: 1>, scalar_prefetch = 0 : i64, scratch_operands = 0 : i64, tpu.core_type = #tpu.core_type<tc>, window_params = [{transform_indices = @transform_0, window_bounds = array<i64: 8, 2>}, {transform_indices = @transform_1, window_bounds = array<i64: 8, 4>}, {pipeline_mode = #tpu.pipeline_mode<synchronous>, transform_indices = @transform_2, window_bounds = array<i64: 128, 128>}, {pipeline_mode = #tpu.pipeline_mode<synchronous>, transform_indices = @transform_3, window_bounds = array<i64: 4, 128>}, {pipeline_mode = #tpu.pipeline_mode<synchronous>, transform_indices = @transform_4, window_bounds = array<i64: 1, 128>}, {pipeline_mode = #tpu.pipeline_mode<synchronous>, transform_indices = @transform_5, window_bounds = array<i64: 128, 128>}, {pipeline_mode = #tpu.pipeline_mode<synchronous>, transform_indices = @transform_6, window_bounds = array<i64: 1, 128>}, {pipeline_mode = #tpu.pipeline_mode<synchronous>, transform_indices = @transform_7, window_bounds = array<i64: 128, 128>}, {pipeline_mode = #tpu.pipeline_mode<synchronous>, transform_indices = @transform_8, window_bounds = array<i64: 1, 128>}, {transform_indices = @transform_9, window_bounds = array<i64: 8, 1>}]} {
    %c0 = arith.constant 0 : index
    %c0_0 = arith.constant 0 : index
    %0 = vector.load %arg1[%c0, %c0_0] : memref<8x2xi32, #tpu.memory_space<vmem>>, vector<8x2xi32>
    %1 = tpu.iota {dimensions = array<i32: 1>} : vector<8x128xi32>
    %2 = vector.extract_strided_slice %0 {offsets = [0, 0], sizes = [8, 1], strides = [1, 1]} : vector<8x2xi32> to vector<8x1xi32>
    %3 = vector.broadcast %2 : vector<8x1xi32> to vector<8x128xi32>
    %4 = arith.cmpi eq, %1, %3 : vector<8x128xi32>
    %5 = vector.extract_strided_slice %0 {offsets = [0, 1], sizes = [8, 1], strides = [1, 1]} : vector<8x2xi32> to vector<8x1xi32>
    %6 = vector.broadcast %5 : vector<8x1xi32> to vector<8x128xi32>
    %7 = arith.cmpi eq, %1, %6 : vector<8x128xi32>
    %8 = arith.ori %4, %7 : vector<8x128xi1>
    %9 = arith.extui %8 : vector<8x128xi1> to vector<8x128xi32>
    %10 = arith.sitofp %9 : vector<8x128xi32> to vector<8x128xf32>
    %c0_1 = arith.constant 0 : index
    %c0_2 = arith.constant 0 : index
    %11 = vector.load %arg3[%c0_1, %c0_2] : memref<128x128xf32, #tpu.memory_space<vmem>>, vector<128x128xf32>
    %cst = arith.constant dense<0.000000e+00> : vector<8x128xf32>
    %12 = tpu.matmul %10, %11, %cst {dimension_numbers = #tpu.dot_dimension_numbers<[1], [0], [0], [1], [0, 0, 1, 1], [], []>} : vector<8x128xf32>, vector<128x128xf32>, vector<8x128xf32> -> vector<8x128xf32>
    %c0_3 = arith.constant 0 : index
    %c0_4 = arith.constant 0 : index
    %13 = vector.load %arg5[%c0_3, %c0_4] : memref<1x128xf32, #tpu.memory_space<vmem>>, vector<1x128xf32>
    %14 = vector.broadcast %13 : vector<1x128xf32> to vector<8x128xf32>
    %15 = arith.addf %12, %14 : vector<8x128xf32>
    %c0_5 = arith.constant 0 : index
    %c0_6 = arith.constant 0 : index
    %16 = vector.load %arg2[%c0_5, %c0_6] : memref<8x4xf32, #tpu.memory_space<vmem>>, vector<8x4xf32>
    %c0_7 = arith.constant 0 : index
    %c0_8 = arith.constant 0 : index
    %17 = vector.load %arg4[%c0_7, %c0_8] : memref<4x128xf32, #tpu.memory_space<vmem>>, vector<4x128xf32>
    %18 = vector.extract_strided_slice %16 {offsets = [0, 0], sizes = [8, 1], strides = [1, 1]} : vector<8x4xf32> to vector<8x1xf32>
    %19 = vector.extract_strided_slice %17 {offsets = [0, 0], sizes = [1, 128], strides = [1, 1]} : vector<4x128xf32> to vector<1x128xf32>
    %20 = vector.broadcast %18 : vector<8x1xf32> to vector<8x128xf32>
    %21 = vector.broadcast %19 : vector<1x128xf32> to vector<8x128xf32>
    %22 = arith.mulf %20, %21 : vector<8x128xf32>
    %23 = arith.addf %15, %22 : vector<8x128xf32>
    %24 = vector.extract_strided_slice %16 {offsets = [0, 1], sizes = [8, 1], strides = [1, 1]} : vector<8x4xf32> to vector<8x1xf32>
    %25 = vector.extract_strided_slice %17 {offsets = [1, 0], sizes = [1, 128], strides = [1, 1]} : vector<4x128xf32> to vector<1x128xf32>
    %26 = vector.broadcast %24 : vector<8x1xf32> to vector<8x128xf32>
    %27 = vector.broadcast %25 : vector<1x128xf32> to vector<8x128xf32>
    %28 = arith.mulf %26, %27 : vector<8x128xf32>
    %29 = arith.addf %23, %28 : vector<8x128xf32>
    %30 = vector.extract_strided_slice %16 {offsets = [0, 2], sizes = [8, 1], strides = [1, 1]} : vector<8x4xf32> to vector<8x1xf32>
    %31 = vector.extract_strided_slice %17 {offsets = [2, 0], sizes = [1, 128], strides = [1, 1]} : vector<4x128xf32> to vector<1x128xf32>
    %32 = vector.broadcast %30 : vector<8x1xf32> to vector<8x128xf32>
    %33 = vector.broadcast %31 : vector<1x128xf32> to vector<8x128xf32>
    %34 = arith.mulf %32, %33 : vector<8x128xf32>
    %35 = arith.addf %29, %34 : vector<8x128xf32>
    %36 = vector.extract_strided_slice %16 {offsets = [0, 3], sizes = [8, 1], strides = [1, 1]} : vector<8x4xf32> to vector<8x1xf32>
    %37 = vector.extract_strided_slice %17 {offsets = [3, 0], sizes = [1, 128], strides = [1, 1]} : vector<4x128xf32> to vector<1x128xf32>
    %38 = vector.broadcast %36 : vector<8x1xf32> to vector<8x128xf32>
    %39 = vector.broadcast %37 : vector<1x128xf32> to vector<8x128xf32>
    %40 = arith.mulf %38, %39 : vector<8x128xf32>
    %41 = arith.addf %35, %40 : vector<8x128xf32>
    %42 = math.tanh %41 : vector<8x128xf32>
    %c0_9 = arith.constant 0 : index
    %c0_10 = arith.constant 0 : index
    %43 = vector.load %arg6[%c0_9, %c0_10] : memref<128x128xf32, #tpu.memory_space<vmem>>, vector<128x128xf32>
    %c0_11 = arith.constant 0 : index
    %c0_12 = arith.constant 0 : index
    %44 = vector.load %arg7[%c0_11, %c0_12] : memref<1x128xf32, #tpu.memory_space<vmem>>, vector<1x128xf32>
    %cst_13 = arith.constant dense<0.000000e+00> : vector<8x128xf32>
    %45 = tpu.matmul %42, %43, %cst_13 {dimension_numbers = #tpu.dot_dimension_numbers<[1], [0], [0], [1], [0, 0, 1, 1], [], []>} : vector<8x128xf32>, vector<128x128xf32>, vector<8x128xf32> -> vector<8x128xf32>
    %46 = vector.broadcast %44 : vector<1x128xf32> to vector<8x128xf32>
    %47 = arith.addf %45, %46 : vector<8x128xf32>
    %48 = math.tanh %47 : vector<8x128xf32>
    %c0_14 = arith.constant 0 : index
    %c0_15 = arith.constant 0 : index
    %49 = vector.load %arg8[%c0_14, %c0_15] : memref<128x128xf32, #tpu.memory_space<vmem>>, vector<128x128xf32>
    %c0_16 = arith.constant 0 : index
    %c0_17 = arith.constant 0 : index
    %50 = vector.load %arg9[%c0_16, %c0_17] : memref<1x128xf32, #tpu.memory_space<vmem>>, vector<1x128xf32>
    %cst_18 = arith.constant dense<0.000000e+00> : vector<8x128xf32>
    %51 = tpu.matmul %48, %49, %cst_18 {dimension_numbers = #tpu.dot_dimension_numbers<[1], [0], [0], [1], [0, 0, 1, 1], [], []>} : vector<8x128xf32>, vector<128x128xf32>, vector<8x128xf32> -> vector<8x128xf32>
    %52 = vector.broadcast %50 : vector<1x128xf32> to vector<8x128xf32>
    %53 = arith.addf %51, %52 : vector<8x128xf32>
    %54 = vector.extract_strided_slice %53 {offsets = [0, 0], sizes = [8, 1], strides = [1, 1]} : vector<8x128xf32> to vector<8x1xf32>
    %55 = arith.negf %54 : vector<8x1xf32>
    %56 = math.exp %55 : vector<8x1xf32>
    %cst_19 = arith.constant 1.000000e+00 : f32
    %57 = vector.broadcast %cst_19 : f32 to vector<8x1xf32>
    %58 = arith.addf %57, %56 : vector<8x1xf32>
    %59 = arith.divf %57, %58 : vector<8x1xf32>
    %c0_20 = arith.constant 0 : index
    %c0_21 = arith.constant 0 : index
    %60 = vector.load %arg10[%c0_20, %c0_21] : memref<8x1xf32, #tpu.memory_space<vmem>>, vector<8x1xf32>
    tpu.vector_store %arg10[%c0_20, %c0_21], %59 {strides = array<i32>} : memref<8x1xf32, #tpu.memory_space<vmem>>, vector<8x1xf32>,
    return
  }
  func.func @transform_0(%arg0: i32) -> (i32, i32) {
    %c0_i32 = arith.constant 0 : i32
    %c0_i32_0 = arith.constant 0 : i32
    return %arg0, %c0_i32 : i32, i32
  }
  func.func @transform_1(%arg0: i32) -> (i32, i32) {
    %c0_i32 = arith.constant 0 : i32
    %c0_i32_0 = arith.constant 0 : i32
    return %arg0, %c0_i32 : i32, i32
  }
  func.func @transform_2(%arg0: i32) -> (i32, i32) {
    %c0_i32 = arith.constant 0 : i32
    %c0_i32_0 = arith.constant 0 : i32
    %c0_i32_1 = arith.constant 0 : i32
    return %c0_i32, %c0_i32_0 : i32, i32
  }
  func.func @transform_3(%arg0: i32) -> (i32, i32) {
    %c0_i32 = arith.constant 0 : i32
    %c0_i32_0 = arith.constant 0 : i32
    %c0_i32_1 = arith.constant 0 : i32
    return %c0_i32, %c0_i32_0 : i32, i32
  }
  func.func @transform_4(%arg0: i32) -> (i32, i32) {
    %c0_i32 = arith.constant 0 : i32
    %c0_i32_0 = arith.constant 0 : i32
    %c0_i32_1 = arith.constant 0 : i32
    return %c0_i32, %c0_i32_0 : i32, i32
  }
  func.func @transform_5(%arg0: i32) -> (i32, i32) {
    %c0_i32 = arith.constant 0 : i32
    %c0_i32_0 = arith.constant 0 : i32
    %c0_i32_1 = arith.constant 0 : i32
    return %c0_i32, %c0_i32_0 : i32, i32
  }
  func.func @transform_6(%arg0: i32) -> (i32, i32) {
    %c0_i32 = arith.constant 0 : i32
    %c0_i32_0 = arith.constant 0 : i32
    %c0_i32_1 = arith.constant 0 : i32
    return %c0_i32, %c0_i32_0 : i32, i32
  }
  func.func @transform_7(%arg0: i32) -> (i32, i32) {
    %c0_i32 = arith.constant 0 : i32
    %c0_i32_0 = arith.constant 0 : i32
    %c0_i32_1 = arith.constant 0 : i32
    return %c0_i32, %c0_i32_0 : i32, i32
  }
  func.func @transform_8(%arg0: i32) -> (i32, i32) {
    %c0_i32 = arith.constant 0 : i32
    %c0_i32_0 = arith.constant 0 : i32
    %c0_i32_1 = arith.constant 0 : i32
    return %c0_i32, %c0_i32_0 : i32, i32
  }
  func.func @transform_9(%arg0: i32) -> (i32, i32) {
    %c0_i32 = arith.constant 0 : i32
    %c0_i32_0 = arith.constant 0 : i32
    return %arg0, %c0_i32 : i32, i32
  }
}

</mosaic_0001>

<bundles_post_ra>
// kernel: tpu_custom_call.1
= control target key start
LH: loop header
LB: loop body
LE: loop exit
PB: predicated region body
PF: predicated region fallthrough
CT: control target
= control target key end

     0   :  { %14 = vsyncpa [#allocation3], 0  ;;  %s922_s0 = inlined_call_operand.vmem [shape: s32[8,2], index: 0, kind: input, shape index: {}]   ;;  %s923_s1 = inlined_call_operand.vmem [shape: f32[8,4], index: 1, kind: input, shape index: {}]   ;;  %s924_s2 = inlined_call_operand.hbm [shape: f32[128,128], index: 2, kind: input, shape index: {}]   ;;  %s925_s3 = inlined_call_operand.vmem [shape: f32[4,128], index: 3, kind: input, shape index: {}]   ;;  %s926_s4 = inlined_call_operand.vmem [shape: f32[1,128], index: 4, kind: input, shape index: {}]   ;;  %s927_s5 = inlined_call_operand.hbm [shape: f32[128,128], index: 5, kind: input, shape index: {}]   ;;  %s928_s6 = inlined_call_operand.vmem [shape: f32[1,128], index: 6, kind: input, shape index: {}]   ;;  %s929_s7 = inlined_call_operand.hbm [shape: f32[128,128], index: 7, kind: input, shape index: {}]   ;;  %s930_s8 = inlined_call_operand.vmem [shape: f32[1,128], index: 8, kind: input, shape index: {}]   ;;  %s931_s9 = inlined_call_operand.vmem [shape: f32[8,1], index: 9, kind: output, shape index: {}]  }
   0x1   :  { %15 = vsyncpa [#allocation5], 0  ;;  %s756_s30 = smov [#allocation4]   ;;  %s757_s11 = smov [#allocation2]  }
   0x2   :  { %s41_s10 = sshll.u32 %s756_s30, 4  ;;  %s25_s12 = sshll.u32 %s757_s11, 4  ;;  %s42_s10 = int_to_ptr.vmem [resolvable:$true] %s41_s10  ;;  %s819_s12 = int_to_ptr.vmem [resolvable:$true] %s25_s12 }
   0x3   :  { %s686_s15 = scalar_lea.hbm %s927_s5, 2048 }
   0x4   :  { %p687_p0 = scmp.ne.s32.totalorder %s927_s5, %s686_s15  ;;  %p690_p1 = scmp.lt.u32.totalorder %s686_s15, %s927_s5 }
   0x6   :  { %p692_p2 = pnand %p690_p1, %p687_p0 }
   0x8   :  { %695 = shalt.err (!%p692_p2)
}
   0x9   :  { %s696_s20 = scalar_lea.vmem %s42_s10, 2048  ;;  %p701_p4 = scmp.lt.s32.totalorder %s42_s10, %s42_s10 }
   0xa   :  { %p697_p3 = scmp.ne.s32.totalorder %s42_s10, %s696_s20  ;;  %p702_p5 = scmp.lt.s32.totalorder %s696_s20, %s696_s20 }
   0xc   :  { %p703_p6 = por %p702_p5, %p701_p4 }
   0xe   :  { %p704_p7 = pnand %p703_p6, %p697_p3 }
  0x10   :  { %707 = shalt.err (!%p704_p7)
}
  0x11   :  { %s758_s21 = smov 128   ;;  %s759_s22 = smov 8  }
  0x12   :  { %47 = dma.hbm_to_vmem [thread:$0]  %s927_s5, 2048, %s42_s10, [#allocation5], %s758_s21, %s758_s21, %s759_s22  }
  0x13   :  { %s708_s27 = scalar_lea.hbm %s924_s2, 2048 }
  0x14   :  { %p709_p8 = scmp.ne.s32.totalorder %s924_s2, %s708_s27  ;;  %p712_p9 = scmp.lt.u32.totalorder %s708_s27, %s924_s2 }
  0x16   :  { %p714_p10 = pnand %p712_p9, %p709_p8 }
  0x18   :  { %717 = shalt.err (!%p714_p10)
}
  0x19   :  { %s718_s13 = scalar_lea.vmem %s819_s12, 2048  ;;  %p723_p12 = scmp.lt.s32.totalorder %s819_s12, %s819_s12 }
  0x1a   :  { %p719_p11 = scmp.ne.s32.totalorder %s819_s12, %s718_s13  ;;  %p724_p13 = scmp.lt.s32.totalorder %s718_s13, %s718_s13 }
  0x1c   :  { %p725_p0 = por %p724_p13, %p723_p12 }
  0x1e   :  { %p726_p1 = pnand %p725_p0, %p719_p11 }
  0x20   :  { %729 = shalt.err (!%p726_p1)
}
  0x21   :  { %31 = dma.hbm_to_vmem [thread:$0]  %s924_s2, 2048, %s819_s12, [#allocation3], %s758_s21, %s758_s21, %s759_s22  }
  0x22   :  { %s760_s14 = smov [#allocation6]   ;;  %s730_s18 = scalar_lea.hbm %s929_s7, 2048 }
  0x23   :  { %s55_s15 = sshll.u32 %s760_s14, 4  ;;  %p731_p2 = scmp.ne.s32.totalorder %s929_s7, %s730_s18  ;;  %s56_s15 = int_to_ptr.vmem [resolvable:$true] %s55_s15 }
  0x24   :  { %p734_p3 = scmp.lt.u32.totalorder %s730_s18, %s929_s7 }
  0x26   :  { %p736_p4 = pnand %p734_p3, %p731_p2 }
  0x28   :  { %739 = shalt.err (!%p736_p4)
}
  0x29   :  { %s740_s25 = scalar_lea.vmem %s56_s15, 2048  ;;  %p745_p6 = scmp.lt.s32.totalorder %s56_s15, %s56_s15 }
  0x2a   :  { %p741_p5 = scmp.ne.s32.totalorder %s56_s15, %s740_s25  ;;  %p746_p7 = scmp.lt.s32.totalorder %s740_s25, %s740_s25 }
  0x2c   :  { %p747_p8 = por %p746_p7, %p745_p6 }
  0x2e   :  { %p748_p9 = pnand %p747_p8, %p741_p5 }
  0x30   :  { %751 = shalt.err (!%p748_p9)
}
  0x31   :  { %61 = dma.hbm_to_vmem [thread:$0]  %s929_s7, 2048, %s56_s15, [#allocation5], %s758_s21, %s758_s21, %s759_s22  }
  0x32   :  { %752 = dma.done.wait [#allocation3], 2048  }
  0x33   :  { %753 = vsyncadd [#allocation3], 4294965248 }
  0x34   :  { %754 = dma.done.wait [#allocation5], 4096  }
  0x35   :  { %755 = vsyncadd [#allocation5], 4294963200  ;;  %v761_v0 = vmov 0   ;;  %v762_v1 = vmov 0.0|0.0   ;;  %v73_v2 = vld [vmem:[%s922_s0] sm:$0xff]  ;;  %v88_v4 = vld [vmem:[#allocation2 + $0x8] sm:$0xff]  ;;  %v74_v41 = vlaneseq }
  0x36   :  { %672 = vset.pattern.permute.xlu0 %v761_v0  ;;  %587 = vmatprep.subr.bf16.mxu0 %v762_v1  ;;  %v87_v3 = vld [vmem:[#allocation2] sm:$0xff]  ;;  %v89_v6 = vld [vmem:[#allocation2 + $0x10] sm:$0xff]  ;;  %v90_v7 = vld [vmem:[#allocation2 + $0x18] sm:$0xff]  ;;  %v763_v11 = vmov 1   ;;  %vm764_vm0 = vmmov 0   ;;  %v765_v15 = vmov 0.0  }
  0x37   :  { %674 = vset.pattern.permute.xlu1 %v761_v0  ;;  %611 = vmatprep.subr.bf16.mxu1 %v762_v1  ;;  %v588_v5 = vpack.c.bf16 %v88_v4, %v87_v3  ;;  %v591_v8 = vpack.c.bf16 %v90_v7, %v89_v6  ;;  %v91_v9 = vld [vmem:[#allocation2 + $0x20] sm:$0xff]  ;;  %v92_v10 = vld [vmem:[#allocation2 + $0x28] sm:$0xff]  ;;  %v93_v13 = vld [vmem:[#allocation2 + $0x30] sm:$0xff]  ;;  %v766_v22 = vmov 3   ;;  %v767_v33 = vmov 2  }
  0x38   :  { %77 = vperm.xlu0 %672, %v73_v2   ;;  %v594_v12 = vpack.c.bf16 %v92_v10, %v91_v9  ;;  %v94_v14 = vld [vmem:[#allocation2 + $0x38] sm:$0xff]  ;;  %514 = vmatprep.mubr.msk.f32.mxu0 %vm764_vm0, %v765_v15  ;;  %v180_v16 = vld [vmem:[%s923_s1] sm:$0xff]  ;;  %v225_v18 = vld [vmem:[#allocation4 + $0x8] sm:$0xff]  ;;  %v75_v43 = vand.u32 127, %v74_v41  ;;  %v768_v45 = vmov 1.0   ;;  %vm417_vm4 = vcmask 7168  }
  0x39   :  { %589 = vmatpush3.bf16.msra.mxu0 %v588_v5  ;;  %v224_v17 = vld [vmem:[#allocation4] sm:$0xff]  ;;  %549 = vmatprep.mubr.msk.f32.mxu1 %vm764_vm0, %v765_v15  ;;  %v226_v20 = vld [vmem:[#allocation4 + $0x10] sm:$0xff]  ;;  %v227_v21 = vld [vmem:[#allocation4 + $0x18] sm:$0xff]  ;;  %v597_v23 = vpack.c.bf16 %v94_v14, %v93_v13  ;;  %v188_v14 = vshrl.u32 %v74_v41, 7 }
  0x3a   :  { %590 = vmatprep.subr.bf16.mxu0 %v762_v1  ;;  %184 = vperm.xlu1 %674, %v180_v16   ;;  %v612_v19 = vpack.c.bf16 %v225_v18, %v224_v17  ;;  %v95_v24 = vld [vmem:[#allocation2 + $0x40] sm:$0xff]  ;;  %v96_v25 = vld [vmem:[#allocation2 + $0x48] sm:$0xff]  ;;  %v615_v26 = vpack.c.bf16 %v227_v21, %v226_v20  ;;  %v97_v30 = vld [vmem:[#allocation2 + $0x50] sm:$0xff] }
  0x3b   :  { %v228_v27 = vld [vmem:[#allocation4 + $0x20] sm:$0xff]  ;;  %v229_v28 = vld [vmem:[#allocation4 + $0x28] sm:$0xff]  ;;  %v600_v29 = vpack.c.bf16 %v96_v25, %v95_v24  ;;  %v98_v31 = vld [vmem:[#allocation2 + $0x58] sm:$0xff]  ;;  %v199_v18 = vsub.s32 1, %v188_v14  ;;  %v219_v21 = vsub.s32 3, %v188_v14 }
  0x3c   :  { %673 = vset.pattern.permute.xlu0 %v763_v11  ;;  %613 = vmatpush3.bf16.msra.mxu1 %v612_v19  ;;  %v618_v32 = vpack.c.bf16 %v229_v28, %v228_v27  ;;  %v603_v34 = vpack.c.bf16 %v98_v31, %v97_v30  ;;  %v99_v35 = vld [vmem:[#allocation2 + $0x60] sm:$0xff]  ;;  %v100_v36 = vld [vmem:[#allocation2 + $0x68] sm:$0xff]  ;;  %v101_v38 = vld [vmem:[#allocation2 + $0x70] sm:$0xff]  ;;  %v209_v19 = vsub.s32 2, %v188_v14 }
  0x3d   :  { %81 = vperm.xlu0 %673, %v73_v2   ;;  %592 = vmatpush3.bf16.msra.mxu0 %v591_v8  ;;  %v606_v37 = vpack.c.bf16 %v100_v36, %v99_v35  ;;  %v102_v39 = vld [vmem:[#allocation2 + $0x78] sm:$0xff]  ;;  %v230_v46 = vld [vmem:[#allocation4 + $0x30] sm:$0xff]  ;;  %v232_v49 = vld [vmem:[#allocation4 + $0x40] sm:$0xff] }
  0x3e   :  { %593 = vmatprep.subr.bf16.mxu0 %v762_v1  ;;  %675 = vset.pattern.permute.xlu1 %v763_v11  ;;  %v609_v40 = vpack.c.bf16 %v102_v39, %v101_v38  ;;  %v231_v47 = vld [vmem:[#allocation4 + $0x38] sm:$0xff]  ;;  %v233_v50 = vld [vmem:[#allocation4 + $0x48] sm:$0xff]  ;;  %v234_v52 = vld [vmem:[#allocation4 + $0x50] sm:$0xff] }
  0x3f   :  { %614 = vmatprep.subr.bf16.mxu1 %v762_v1  ;;  %194 = vperm.xlu1 %675, %v180_v16   ;;  %v621_v48 = vpack.c.bf16 %v231_v47, %v230_v46  ;;  %v624_v51 = vpack.c.bf16 %v233_v50, %v232_v49  ;;  %v235_v53 = vld [vmem:[#allocation4 + $0x58] sm:$0xff]  ;;  %v236_v55 = vld [vmem:[#allocation4 + $0x60] sm:$0xff]  ;;  %v237_v56 = vld [vmem:[#allocation4 + $0x68] sm:$0xff] }
  0x40   :  { %616 = vmatpush3.bf16.msra.mxu1 %v615_v26  ;;  %v627_v54 = vpack.c.bf16 %v235_v53, %v234_v52  ;;  %v630_v57 = vpack.c.bf16 %v237_v56, %v236_v55  ;;  %v238_v58 = vld [vmem:[#allocation4 + $0x70] sm:$0xff]  ;;  %v239_v59 = vld [vmem:[#allocation4 + $0x78] sm:$0xff]  ;;  %v318_v61 = vld [vmem:[#allocation6] sm:$0xff] }
  0x41   :  { %677 = vset.pattern.permute.xlu0 %v766_v22  ;;  %595 = vmatpush3.bf16.msra.mxu0 %v594_v12  ;;  %v633_v60 = vpack.c.bf16 %v239_v59, %v238_v58  ;;  %v319_v62 = vld [vmem:[#allocation6 + $0x8] sm:$0xff]  ;;  %v320_v63 = vld [vmem:[#allocation6 + $0x10] sm:$0xff]  ;;  %v321_v2 = vld [vmem:[#allocation6 + $0x18] sm:$0xff] }
  0x42   :  { %214 = vperm.xlu0 %677, %v180_v16   ;;  %596 = vmatprep.subr.bf16.mxu0 %v762_v1  ;;  %v636_v0 = vpack.c.bf16 %v319_v62, %v318_v61  ;;  %v639_v3 = vpack.c.bf16 %v321_v2, %v320_v63  ;;  %v322_v4 = vld [vmem:[#allocation6 + $0x20] sm:$0xff]  ;;  %v323_v5 = vld [vmem:[#allocation6 + $0x28] sm:$0xff]  ;;  %v324_v7 = vld [vmem:[#allocation6 + $0x30] sm:$0xff] }
  0x43   :  { %617 = vmatprep.subr.bf16.mxu1 %v762_v1  ;;  %676 = vset.pattern.permute.xlu1 %v767_v33  ;;  %v642_v6 = vpack.c.bf16 %v323_v5, %v322_v4  ;;  %v325_v8 = vld [vmem:[#allocation6 + $0x38] sm:$0xff]  ;;  %v326_v10 = vld [vmem:[#allocation6 + $0x40] sm:$0xff]  ;;  %v327_v11 = vld [vmem:[#allocation6 + $0x48] sm:$0xff] }
  0x44   :  { %204 = vperm.xlu1 %676, %v180_v16   ;;  %619 = vmatpush3.bf16.msra.mxu1 %v618_v32  ;;  %v645_v9 = vpack.c.bf16 %v325_v8, %v324_v7  ;;  %v648_v12 = vpack.c.bf16 %v327_v11, %v326_v10  ;;  %v181_v16 = vld [vmem:[%s925_s3] sm:$0xf]  ;;  %v329_v41 = vld [vmem:[#allocation6 + $0x58] sm:$0xff]  ;;  %v332_v46 = vld [vmem:[#allocation6 + $0x70] sm:$0xff] }
  0x45   :  { %598 = vmatpush3.bf16.msra.mxu0 %v597_v23  ;;  %620 = vmatprep.subr.bf16.mxu1 %v762_v1  ;;  %v426_v22 = vld [vmem:[%s926_s4] ss:$0 sm:$0xff]  ;;  %v200_v23 = vrot.slane %v181_v16, %v199_v18  ;;  %v210_v24 = vrot.slane %v181_v16, %v209_v19  ;;  %v220_v30 = vrot.slane %v181_v16, %v219_v21  ;;  %v333_v47 = vld [vmem:[#allocation6 + $0x78] sm:$0xff] }
  0x46   :  { %599 = vmatprep.subr.bf16.mxu0 %v762_v1  ;;  %v428_v49 = vld [vmem:[%s928_s6] ss:$0 sm:$0xff] }
  0x48   :  { %622 = vmatpush3.bf16.msra.mxu1 %v621_v48  ;;  %v657_v48 = vpack.c.bf16 %v333_v47, %v332_v46 }
  0x49   :  { %601 = vmatpush3.bf16.msra.mxu0 %v600_v29  ;;  %623 = vmatprep.subr.bf16.mxu1 %v762_v1 }
  0x4a   :  { %602 = vmatprep.subr.bf16.mxu0 %v762_v1 }
  0x4c   :  { %625 = vmatpush3.bf16.msra.mxu1 %v624_v51 }
  0x4d   :  { %604 = vmatpush3.bf16.msra.mxu0 %v603_v34  ;;  %626 = vmatprep.subr.bf16.mxu1 %v762_v1 }
  0x4e   :  { %605 = vmatprep.subr.bf16.mxu0 %v762_v1 }
  0x50   :  { %628 = vmatpush3.bf16.msra.mxu1 %v627_v54  ;;  %v429_v54 = vld [vmem:[%s930_s8] ss:$0 sm:$0xff] }
  0x51   :  { %607 = vmatpush3.bf16.msra.mxu0 %v606_v37  ;;  %629 = vmatprep.subr.bf16.mxu1 %v762_v1 }
  0x52   :  { %608 = vmatprep.subr.bf16.mxu0 %v762_v1 }
  0x54   :  { %631 = vmatpush3.bf16.msra.mxu1 %v630_v57 }
  0x55   :  { %610 = vmatpush3.bf16.msra.mxu0 %v609_v40  ;;  %632 = vmatprep.subr.bf16.mxu1 %v762_v1  ;;  %v328_v40 = vld [vmem:[#allocation6 + $0x50] sm:$0xff] }
  0x56   :  { %635 = vmatprep.subr.bf16.mxu0 %v762_v1 }
  0x58   :  { %634 = vmatpush3.bf16.msra.mxu1 %v633_v60 }
  0xb7   :  { %v78_v42 = vpop.permute.xlu0 %77 }
  0xb8   :  { %vm79_vm1 = vcmp.eq.s32.totalorder %v75_v43, %v78_v42  ;;  %v651_v42 = vpack.c.bf16 %v329_v41, %v328_v40 }
  0xb9   :  { %v185_v13 = vpop.permute.xlu1 %184 }
  0xbc   :  { %v82_v44 = vpop.permute.xlu0 %81 }
  0xbd   :  { %vm83_vm2 = vcmp.eq.s32.totalorder %v75_v43, %v82_v44  ;;  %v330_v43 = vld [vmem:[#allocation6 + $0x60] sm:$0xff]  ;;  %v331_v44 = vld [vmem:[#allocation6 + $0x68] sm:$0xff] }
  0xbe   :  { %vm84_vm3 = vmor %vm79_vm1, %vm83_vm2  ;;  %v195_v17 = vpop.permute.xlu1 %194 }
  0xbf   :  { %515 = vmatmul.mubr.msk.f32.vlgmr.msra.gmra.mrb[0].mxu0 %vm84_vm3, %v768_v45  ;;  %v201_v32 = vmul.f32 %v200_v23, %v195_v17  ;;  %v654_v45 = vpack.c.bf16 %v331_v44, %v330_v43 }
  0xc0   :  { %584 = vmatprep.mubr.msk.f32.mxu0 %vm764_vm0, %v765_v15  ;;  %637 = vmatpush3.bf16.msra.mxu0 %v636_v0  ;;  %v189_v15 = vsub.s32 0, %v188_v14 }
  0xc1   :  { %638 = vmatprep.subr.bf16.mxu0 %v762_v1  ;;  %v215_v31 = vpop.permute.xlu0 %214 }
  0xc2   :  { %v190_v20 = vrot.slane %v181_v16, %v189_v15  ;;  %v221_v36 = vmul.f32 %v220_v30, %v215_v31 }
  0xc3   :  { %v205_v26 = vpop.permute.xlu1 %204 }
  0xc4   :  { %640 = vmatpush3.bf16.msra.mxu0 %v639_v3  ;;  %v191_v27 = vmul.f32 %v190_v20, %v185_v13  ;;  %v211_v34 = vmul.f32 %v210_v24, %v205_v26 }
  0xc5   :  { %641 = vmatprep.subr.bf16.mxu0 %v762_v1 }
  0xc8   :  { %643 = vmatpush3.bf16.msra.mxu0 %v642_v6 }
  0xc9   :  { %644 = vmatprep.subr.bf16.mxu0 %v762_v1 }
  0xcc   :  { %646 = vmatpush3.bf16.msra.mxu0 %v645_v9 }
  0xcd   :  { %647 = vmatprep.subr.bf16.mxu0 %v762_v1 }
  0xd0   :  { %649 = vmatpush3.bf16.msra.mxu0 %v648_v12 }
  0xd1   :  { %650 = vmatprep.subr.bf16.mxu0 %v762_v1 }
  0xd4   :  { %652 = vmatpush3.bf16.msra.mxu0 %v651_v42 }
  0xd5   :  { %653 = vmatprep.subr.bf16.mxu0 %v762_v1 }
  0xd8   :  { %655 = vmatpush3.bf16.msra.mxu0 %v654_v45 }
  0xd9   :  { %656 = vmatprep.subr.bf16.mxu0 %v762_v1 }
  0xdc   :  { %658 = vmatpush3.bf16.msra.mxu0 %v657_v48 }
 0x192   :  { %v176_v25 = vpop.f32.mrb[0].mxu0 }
 0x193   :  { %v177_v28 = vadd.f32 %v426_v22, %v176_v25  ;;  %v516_v29 = vpop.f32.mrb[1].mxu0 }
 0x195   :  { %v192_v33 = vadd.f32 %v191_v27, %v177_v28 }
 0x197   :  { %v202_v35 = vadd.f32 %v201_v32, %v192_v33 }
 0x199   :  { %v212_v37 = vadd.f32 %v211_v34, %v202_v35 }
 0x19b   :  { %v222_v38 = vadd.f32 %v221_v36, %v212_v37 }
 0x19d   :  { %678 = vtanh.f32 %v222_v38 }
 0x1a7   :  { %v679_v39 = vpop.eup %678 }
 0x1a8   :  { %550 = vmatmul.mubr.f32.vlgmr.msra.gmra.mrb[0].mxu1 %v679_v39 }
 0x27b   :  { %v313_v50 = vpop.f32.mrb[0].mxu1 }
 0x27c   :  { %v314_v51 = vadd.f32 %v428_v49, %v313_v50  ;;  %v551_v52 = vpop.f32.mrb[1].mxu1 }
 0x27e   :  { %680 = vtanh.f32 %v314_v51 }
 0x288   :  { %v681_v53 = vpop.eup %680 }
 0x289   :  { %585 = vmatmul.mubr.f32.vlgmr.msra.gmra.mrb[2].mxu0 %v681_v53 }
 0x35c   :  { %v407_v55 = vpop.f32.mrb[2].mxu0 }
 0x35d   :  { %v408_v56 = vadd.f32 %v429_v54, %v407_v55  ;;  %v586_v57 = vpop.f32.mrb[3].mxu0 }
 0x35f   :  { %v430_v58 = vmul.f32 -1.442695, %v408_v56 }
 0x361   :  { %682 = vpow2.f32 %v430_v58 }
 0x36b   :  { %v683_v1 = vpop.eup %682 }
 0x36c   :  { %v414_v59 = vadd.f32 1.0, %v683_v1 }
 0x36e   :  { %684 = vrcp.f32 %v414_v59 }
 0x378   :  { %v685_v60 = vpop.eup %684 }
 0x379   :  { %418 = vst.msk [vmem:[%s931_s9] sm:$0xff] %vm417_vm4, %v685_v60 }
 0x37a   :  { %423 = vsyncpa [#allocation3], 1 }
 0x37b   :  { %424 = vsyncpa [#allocation5], 1 }

</bundles_post_ra>
